<compile_context>
chip_gen: v5e
topology: v5e:2x2
jax: 0.10.0
libtpu: 0.0.40
codegen_flags: <defaults>
</compile_context>

<pallas_src>
import functools

import jax
import jax.numpy as jnp
from jax.experimental import pallas as pl
from jax.experimental.pallas import tpu as pltpu

# Constants from the reference module
Class_Count = 3
N = 160
Sample_Length = 1200
J = int(Sample_Length / N)   # = 7
K = 200


def _ceil_div(a, b):
    return -(-a // b)


def _round_up(a, b):
    return _ceil_div(a, b) * b


def classifier_kernel(x_ref, wt_ref, o_ref, *, total_rows, group_size):
    """One grid step: logits for a tile of TG groups (TR raw rows).

    x_ref : (TR, K) f32   raw rows (last block may run past `total_rows`)
    wt_ref: (K, C)  f32   linear weight, pre-transposed
    o_ref : (TG, C) f32   per-group logits
    """
    TR = x_ref.shape[0]
    TG, _C = o_ref.shape
    Jg = group_size
    row0 = pl.program_id(0) * TR          # global index of this tile's first row
    grp0 = pl.program_id(0) * TG          # global index of this tile's first group

    # 1) Per-row logits: one lane-dense MXU matmul over the raw rows, f32 accumulation.
    y = jnp.dot(x_ref[...], wt_ref[...], preferred_element_type=jnp.float32)   # (TR, C)

    # 2) Zero rows past the end of x: the tail of a partial last block holds undefined
    #    VMEM bytes.  jnp.where (select) is NaN/Inf-safe, unlike a multiplicative mask.
    r = jax.lax.broadcasted_iota(jnp.int32, (TR, 1), 0) + row0
    y = jnp.where(r < total_rows, y, 0.0)

    # 3) Sum groups of J consecutive rows as a tiny second matmul against a 0/1
    #    pooling matrix built in-kernel from iotas: no HBM traffic, no 3-D blocks,
    #    no reshapes / strided slices -- only iota/compare/select/dot.
    g = jax.lax.broadcasted_iota(jnp.int32, (TG, TR), 0)
    rr = jax.lax.broadcasted_iota(jnp.int32, (TG, TR), 1)
    pool = jnp.where((rr >= g * Jg) & (rr < (g + 1) * Jg), 1.0, 0.0)            # (TG, TR)
    sums = jnp.dot(pool, y, preferred_element_type=jnp.float32)                 # (TG, C)

    # 4) Divide by each group's true row count (the trailing group may be partial).
    gid = jax.lax.broadcasted_iota(jnp.int32, (TG, 1), 0) + grp0
    cnt = jnp.clip(total_rows - gid * Jg, 1, Jg).astype(jnp.float32)            # (TG, 1)
    o_ref[...] = sums / cnt


def _single_tensorcore_device() -> bool:
    """v5e / v6e have one TensorCore per chip: splitting the grid only adds per-step
    overhead there.  v7x (2 TCs) and megacore chips benefit from >= 2 parallel steps."""
    try:
        kind = jax.devices()[0].device_kind.lower()
    except Exception:
        return False
    return any(t in kind for t in
               ("v5e", "v5 lite", "v5lite", "v6e", "v6 lite", "v6lite"))


def classifier_forward(x, wt, *, block_groups=None):
    """Forward pass of `Classifier`.

    x : (L, K) f32 raw rows, fed straight to the kernel (no pad / cast / reshape pass)
    wt: (K, Class_Count) f32 -- nn.Linear weight transposed ONCE by the caller
    returns (ceil(L / J), Class_Count) f32 logits
    """
    L, k = x.shape
    assert k == K, f"last dim of x must be K={K}, got {k}"
    Kw, C = wt.shape
    assert Kw == K

    G = _ceil_div(L, J)          # number of groups; last may be partial (L % J != 0)

    if block_groups is None:
        want_tiles = 1 if (_single_tensorcore_device() or G < 16) else 2
    else:
        want_tiles = max(1, _ceil_div(G, block_groups))

    # Cap groups/tile: double-buffered x tile (2*TG*J*K*4 B) plus the in-kernel
    # (TG, TG*J) f32 pooling matrix stay ~5 MB at TG=256 -- far under v7x's 64 MiB
    # VMEM / 32 MiB default scoped limit, with plenty of slack on v5e/v6e.
    MAX_TG = 256
    TG = min(MAX_TG, _round_up(_ceil_div(G, want_tiles), 8))
    num_tiles = _ceil_div(G, TG)
    if num_tiles == 1:
        # Single step: use full-array blocks -> no partial-block padding anywhere.
        TG, TR = G, L
    else:
        TR = TG * J              # multiple of 8 (TG is); last block is a partial block

    kernel = functools.partial(classifier_kernel, total_rows=L, group_size=J)

    # NOTE: Class_Count=3 < 128 lanes -> masked partial stores on the (TG, 3) output;
    # negligible at this size (only pad wt to 128 lanes if this feeds a fused pipeline).
    return pl.pallas_call(
        kernel,
        out_shape=jax.ShapeDtypeStruct((G, C), jnp.float32),
        grid=(num_tiles,),
        in_specs=[
            pl.BlockSpec((TR, K), lambda i: (i, 0)),   # raw rows, 2-D lane-dense tile
            pl.BlockSpec((K, C), lambda i: (0, 0)),    # weight: same block every step
        ],
        out_specs=pl.BlockSpec((TG, C), lambda i: (i, 0)),
        compiler_params=pltpu.CompilerParams(
            dimension_semantics=("parallel",)),
    )(x, wt)


if __name__ == "__main__":
    key = jax.random.PRNGKey(0)
    kx, kw = jax.random.split(key)

    # Small demo consistent with the module: 16 full groups of J=7 rows plus a partial
    # trailing group of 3 rows (mirrors Sample_Length % J != 0 in the real config).
    L = 16 * J + 3                      # 115 rows -> 17 groups (last group has 3 rows)
    x = jax.random.normal(kx, (L, K), dtype=jnp.float32)

    # nn.Linear(K, Class_Count, bias=False)-shaped weight; transpose ONCE here.
    bound = 1.0 / (K ** 0.5)
    w = jax.random.uniform(kw, (Class_Count, K),
                           minval=-bound, maxval=bound, dtype=jnp.float32)
    wt = jnp.asarray(w.T)               # (K, Class_Count)

    logits = jax.block_until_ready(classifier_forward(x, wt))

    # Pure-JAX f32 reference of the mean-pool + linear forward pass.
    # TODO(synk): the literal PyTorch `x[range(i, i+J)]` raises IndexError when
    # len(x) % J != 0; the partial trailing group is mean-pooled over its remaining rows.
    feats_ref = jnp.stack([jnp.mean(x[i:i + J], axis=0) for i in range(0, L, J)])
    ref = jnp.dot(feats_ref, w.T, precision=jax.lax.Precision.HIGHEST)

    G = _ceil_div(L, J)
    assert logits.shape == ref.shape == (G, Class_Count)
    assert jnp.allclose(logits, ref, atol=5e-3, rtol=5e-3), (
        f"mismatch vs reference, max abs err={jnp.max(jnp.abs(logits - ref))}")
    print("KERNEL_OK")
</pallas_src>

<mosaic_0001>
module attributes {stable_mosaic.version = 11 : i64} {
  func.func @classifier_kernel(%arg0: i32, %arg1: memref<112x200xf32, #tpu.memory_space<vmem>>, %arg2: memref<200x3xf32, #tpu.memory_space<vmem>>, %arg3: memref<16x3xf32, #tpu.memory_space<vmem>>) attributes {dimension_semantics = [#tpu.dimension_semantics<parallel>], iteration_bounds = array<i64: 2>, scalar_prefetch = 0 : i64, scratch_operands = 0 : i64, tpu.core_type = #tpu.core_type<tc>, window_params = [{transform_indices = @transform_0, window_bounds = array<i64: 112, 200>}, {pipeline_mode = #tpu.pipeline_mode<synchronous>, transform_indices = @transform_1, window_bounds = array<i64: 200, 3>}, {transform_indices = @transform_2, window_bounds = array<i64: 16, 3>}]} {
    %c112_i32 = arith.constant 112 : i32
    %0 = arith.muli %arg0, %c112_i32 : i32
    %c16_i32 = arith.constant 16 : i32
    %1 = arith.muli %arg0, %c16_i32 : i32
    %c0 = arith.constant 0 : index
    %c0_0 = arith.constant 0 : index
    %2 = vector.load %arg1[%c0, %c0_0] : memref<112x200xf32, #tpu.memory_space<vmem>>, vector<112x200xf32>
    %c0_1 = arith.constant 0 : index
    %c0_2 = arith.constant 0 : index
    %3 = vector.load %arg2[%c0_1, %c0_2] : memref<200x3xf32, #tpu.memory_space<vmem>>, vector<200x3xf32>
    %cst = arith.constant dense<0.000000e+00> : vector<112x3xf32>
    %4 = tpu.matmul %2, %3, %cst {dimension_numbers = #tpu.dot_dimension_numbers<[1], [0], [0], [1], [0, 0, 1, 1], [], []>} : vector<112x200xf32>, vector<200x3xf32>, vector<112x3xf32> -> vector<112x3xf32>
    %5 = tpu.iota {dimensions = array<i32: 0>} : vector<112x1xi32>
    %6 = vector.broadcast %0 : i32 to vector<112x1xi32>
    %7 = arith.addi %5, %6 : vector<112x1xi32>
    %c115_i32 = arith.constant 115 : i32
    %8 = vector.broadcast %c115_i32 : i32 to vector<112x1xi32>
    %9 = arith.cmpi slt, %7, %8 : vector<112x1xi32>
    %cst_3 = arith.constant 0.000000e+00 : f32
    %10 = vector.shape_cast %9 : vector<112x1xi1> to vector<112x1xi1>
    %11 = vector.broadcast %10 : vector<112x1xi1> to vector<112x3xi1>
    %12 = vector.broadcast %cst_3 : f32 to vector<112x3xf32>
    %13 = arith.select %11, %4, %12 : vector<112x3xi1>, vector<112x3xf32>
    %14 = tpu.iota {dimensions = array<i32: 0>} : vector<16x112xi32>
    %15 = tpu.iota {dimensions = array<i32: 1>} : vector<16x112xi32>
    %c7_i32 = arith.constant 7 : i32
    %16 = vector.broadcast %c7_i32 : i32 to vector<16x112xi32>
    %17 = arith.muli %14, %16 : vector<16x112xi32>
    %18 = arith.cmpi sge, %15, %17 : vector<16x112xi32>
    %c1_i32 = arith.constant 1 : i32
    %19 = vector.broadcast %c1_i32 : i32 to vector<16x112xi32>
    %20 = arith.addi %14, %19 : vector<16x112xi32>
    %c7_i32_4 = arith.constant 7 : i32
    %21 = vector.broadcast %c7_i32_4 : i32 to vector<16x112xi32>
    %22 = arith.muli %20, %21 : vector<16x112xi32>
    %23 = arith.cmpi slt, %15, %22 : vector<16x112xi32>
    %24 = arith.andi %18, %23 : vector<16x112xi1>
    %cst_5 = arith.constant 1.000000e+00 : f32
    %cst_6 = arith.constant 0.000000e+00 : f32
    %25 = vector.broadcast %cst_5 : f32 to vector<16x112xf32>
    %26 = vector.broadcast %cst_6 : f32 to vector<16x112xf32>
    %27 = arith.select %24, %25, %26 : vector<16x112xi1>, vector<16x112xf32>
    %cst_7 = arith.constant dense<0.000000e+00> : vector<16x3xf32>
    %28 = tpu.matmul %27, %13, %cst_7 {dimension_numbers = #tpu.dot_dimension_numbers<[1], [0], [0], [1], [0, 0, 1, 1], [], []>} : vector<16x112xf32>, vector<112x3xf32>, vector<16x3xf32> -> vector<16x3xf32>
    %29 = tpu.iota {dimensions = array<i32: 0>} : vector<16x1xi32>
    %30 = vector.broadcast %1 : i32 to vector<16x1xi32>
    %31 = arith.addi %29, %30 : vector<16x1xi32>
    %c7_i32_8 = arith.constant 7 : i32
    %32 = vector.broadcast %c7_i32_8 : i32 to vector<16x1xi32>
    %33 = arith.muli %31, %32 : vector<16x1xi32>
    %c115_i32_9 = arith.constant 115 : i32
    %34 = vector.broadcast %c115_i32_9 : i32 to vector<16x1xi32>
    %35 = arith.subi %34, %33 : vector<16x1xi32>
    %c1_i32_10 = arith.constant 1 : i32
    %c7_i32_11 = arith.constant 7 : i32
    %36 = vector.broadcast %c1_i32_10 : i32 to vector<16x1xi32>
    %37 = arith.maxsi %36, %35 : vector<16x1xi32>
    %38 = vector.broadcast %c7_i32_11 : i32 to vector<16x1xi32>
    %39 = arith.minsi %38, %37 : vector<16x1xi32>
    %40 = arith.sitofp %39 : vector<16x1xi32> to vector<16x1xf32>
    %41 = vector.broadcast %40 : vector<16x1xf32> to vector<16x3xf32>
    %42 = arith.divf %28, %41 : vector<16x3xf32>
    %c0_12 = arith.constant 0 : index
    %c0_13 = arith.constant 0 : index
    %43 = vector.load %arg3[%c0_12, %c0_13] : memref<16x3xf32, #tpu.memory_space<vmem>>, vector<16x3xf32>
    tpu.vector_store %arg3[%c0_12, %c0_13], %42 {strides = array<i32>} : memref<16x3xf32, #tpu.memory_space<vmem>>, vector<16x3xf32>,
    return
  }
  func.func @transform_0(%arg0: i32) -> (i32, i32) {
    %c0_i32 = arith.constant 0 : i32
    %c0_i32_0 = arith.constant 0 : i32
    return %arg0, %c0_i32 : i32, i32
  }
  func.func @transform_1(%arg0: i32) -> (i32, i32) {
    %c0_i32 = arith.constant 0 : i32
    %c0_i32_0 = arith.constant 0 : i32
    %c0_i32_1 = arith.constant 0 : i32
    return %c0_i32, %c0_i32_0 : i32, i32
  }
  func.func @transform_2(%arg0: i32) -> (i32, i32) {
    %c0_i32 = arith.constant 0 : i32
    %c0_i32_0 = arith.constant 0 : i32
    return %arg0, %c0_i32 : i32, i32
  }
}

</mosaic_0001>

<bundles_post_ra>
// kernel: tpu_custom_call.1
= control target key start
LH: loop header
LB: loop body
LE: loop exit
PB: predicated region body
PF: predicated region fallthrough
CT: control target
= control target key end

     0   :  { %s1072_s9 = smov 0   ;;  %s1074_s10 = smov 0   ;;  %s1360_s0 = inlined_call_operand.vmem [shape: f32[115,200], index: 0, kind: input, shape index: {}]   ;;  %s1361_s1 = inlined_call_operand.vmem [shape: f32[200,3], index: 1, kind: input, shape index: {}]   ;;  %s1362_s2 = inlined_call_operand.vmem [shape: f32[17,3], index: 2, kind: output, shape index: {}]  }
   0x1   :  { %s1076_s11 = smov 0  }
   0x2 LB: > { %s1085_s12 = sadd.s32 4294967295, %s1022_s11   ;;  %s1087_s13 = sadd.s32 1, %s1022_s11   ;;  %s1022_s11 = sphi %s1076_s11, %s1370_s11   ;;  %s1018_s10 = sphi %s1074_s10, %s1369_s10   ;;  %s1014_s9 = sphi %s1072_s9, %s1368_s9  }
   0x3   : > { %s63_s14 = ssub.s32 %s1022_s11, %s1087_s13  ;;  %s66_s15 = sadd.s32 1, %s1018_s10 }
   0x4   : > { %p64_p0 = scmp.eq.s32.totalorder %s63_s14, 0  ;;  %p76_p1 = scmp.ne.s32.totalorder %s1018_s10, %s1014_s9 }
   0x5   : > { %p77_p2 = scmp.eq.s32.totalorder %s1085_s12, 1  ;;  %p794_p3 = scmp.ge.s32.totalorder %s1022_s11, 1 }
   0x6   : > { %s1095_s16 = scalar_select %p64_p0, %s1018_s10, %s66_s15  }
   0x7   : > { %p1097_p4 = por %p77_p2, %p76_p1  ;;  %p124_p5 = scmp.lt.s32.totalorder %s1022_s11, 3 }
   0x9   : > { %p125_p6 = pnand %p794_p3, %p124_p5 }
   0xa   : > { %s151_s24 = smul.u32 (!%p125_p6), 14, %s1085_s12  ;;  %s148_s3 = sand.u32 (!%p125_p6), 1, %s1014_s9  }
   0xb   : > { %128 = sbr.rel (%p125_p6) target bundleno = 439 (0x1b7), region = 28 }
   0xc   : > { %p157_p7 = scmp.lt.s32.totalorder (!%p125_p6), %s151_s24, 14  ;;  %s173_s30 = smul.u32 (!%p125_p6), 112, %s1085_s12 }
  0x10   : > { %v218_v0 = vld [vmem:[%s1361_s1 + $0x78] sm:$0xff]  ;;  %v227_v1 = vld [vmem:[%s1361_s1 + $0xc0] sm:$0xff]  ;;  %v217_v2 = vld [vmem:[%s1361_s1 + $0x70] sm:$0xff]  ;;  %s1372_s24 = smov (!%p157_p7, %s151_s24), 14  ;;  %vm228_vm0 = vcmask 588800   ;;  %s830_s9 = sshll.u32 (%p1097_p4), %s1085_s12, 1 }
  0x11   : > { %850 = vmatpush.msra.mxu3 %v218_v0  ;;  %337 = vmatpush.msra.mxu1 %v227_v1  ;;  %v226_v3 = vld [vmem:[%s1361_s1 + $0xb8] sm:$0xff]  ;;  %v216_v4 = vld [vmem:[%s1361_s1 + $0x68] sm:$0xff]  ;;  %v225_v5 = vld [vmem:[%s1361_s1 + $0xb0] sm:$0xff]  ;;  %s846_s21 = sshll.u32 %s1372_s24, 4  ;;  %s798_s24 = sshll.u32 %s1085_s12, 4 }
  0x12   : > { %271 = vmatpush.msra.mxu0 %v218_v0  ;;  %866 = vmatpush.msra.mxu2 %v227_v1  ;;  %v215_v6 = vld [vmem:[%s1361_s1 + $0x60] sm:$0xff]  ;;  %v224_v7 = vld [vmem:[%s1361_s1 + $0xa8] sm:$0xff]  ;;  %v214_v8 = vld [vmem:[%s1361_s1 + $0x58] sm:$0xff]  ;;  %s1153_s4 = scalar_lea.vmem %s1360_s0, %s846_s21  ;;  %s1326_s8 = scalar_lea.vmem (%p1097_p4), %s1362_s2, %s798_s24  }
  0x13   : > { %851 = vmatpush.msra.mxu3 %v217_v2  ;;  %338 = vmatpush.msra.mxu1 %v226_v3  ;;  %v223_v9 = vld [vmem:[%s1361_s1 + $0xa0] sm:$0xff]  ;;  %v213_v10 = vld [vmem:[%s1361_s1 + $0x50] sm:$0xff]  ;;  %v222_v11 = vld [vmem:[%s1361_s1 + $0x98] sm:$0xff]  ;;  %s579_s11 = ssub.s32 (%p1097_p4), 3, %s830_s9 }
  0x14   : > { %272 = vmatpush.msra.mxu0 %v217_v2  ;;  %867 = vmatpush.msra.mxu2 %v226_v3  ;;  %v212_v12 = vld [vmem:[%s1361_s1 + $0x48] sm:$0xff]  ;;  %v221_v13 = vld [vmem:[%s1361_s1 + $0x90] sm:$0xff]  ;;  %v211_v14 = vld [vmem:[%s1361_s1 + $0x40] sm:$0xff]  ;;  %p580_p8 = scmp.lt.s32.totalorder (%p1097_p4), %s579_s11, 2 }
  0x15   : > { %852 = vmatpush.msra.mxu3 %v216_v4  ;;  %339 = vmatpush.msra.mxu1 %v225_v5  ;;  %v220_v15 = vld [vmem:[%s1361_s1 + $0x88] sm:$0xff]  ;;  %v210_v16 = vld [vmem:[%s1361_s1 + $0x38] sm:$0xff]  ;;  %v219_v17 = vld [vmem:[%s1361_s1 + $0x80] sm:$0xff] }
  0x16   : > { %273 = vmatpush.msra.mxu0 %v216_v4  ;;  %868 = vmatpush.msra.mxu2 %v225_v5  ;;  %v176_v18 = vld [vmem:[%s1153_s4 + $0x8] sm:$0xff]  ;;  %v209_v19 = vld [vmem:[%s1361_s1 + $0x30] sm:$0xff]  ;;  %v194_v20 = vld [vmem:[%s1153_s4 + $0x98] sm:$0xff] }
  0x17   : > { %853 = vmatpush.msra.mxu3 %v215_v6  ;;  %340 = vmatpush.msra.mxu1 %v224_v7  ;;  %v208_v21 = vld [vmem:[%s1361_s1 + $0x28] sm:$0xff]  ;;  %v207_v22 = vld [vmem:[%s1361_s1 + $0x20] sm:$0xff]  ;;  %v206_v23 = vld [vmem:[%s1361_s1 + $0x18] sm:$0xff] }
  0x18   : > { %274 = vmatpush.msra.mxu0 %v215_v6  ;;  %869 = vmatpush.msra.mxu2 %v224_v7  ;;  %v178_v24 = vld [vmem:[%s1153_s4 + $0x18] sm:$0xff]  ;;  %v205_v25 = vld [vmem:[%s1361_s1 + $0x10] sm:$0xff]  ;;  %v196_v26 = vld [vmem:[%s1153_s4 + $0xa8] sm:$0xff]  ;;  %v389_v7 = vlaneseq }
  0x19   : > { %854 = vmatpush.msra.mxu3 %v214_v8  ;;  %341 = vmatpush.msra.mxu1 %v223_v9  ;;  %v204_v27 = vld [vmem:[%s1361_s1 + $0x8] sm:$0xff]  ;;  %v203_v28 = vld [vmem:[%s1361_s1] sm:$0xff]  ;;  %v189_v29 = vld [vmem:[%s1153_s4 + $0x70] sm:$0xff] }
  0x1a   : > { %275 = vmatpush.msra.mxu0 %v214_v8  ;;  %870 = vmatpush.msra.mxu2 %v223_v9  ;;  %v175_v30 = vld [vmem:[%s1153_s4] sm:$0xff]  ;;  %v180_v31 = vld [vmem:[%s1153_s4 + $0x28] sm:$0xff]  ;;  %v198_v32 = vld [vmem:[%s1153_s4 + $0xb8] sm:$0xff] }
  0x1b   : > { %855 = vmatpush.msra.mxu3 %v213_v10  ;;  %342 = vmatpush.msra.mxu1 %v222_v11  ;;  %v191_v33 = vld [vmem:[%s1153_s4 + $0x80] sm:$0xff]  ;;  %v177_v34 = vld [vmem:[%s1153_s4 + $0x10] sm:$0xff]  ;;  %v182_v35 = vld [vmem:[%s1153_s4 + $0x38] sm:$0xff] }
  0x1c   : > { %276 = vmatpush.msra.mxu0 %v213_v10  ;;  %871 = vmatpush.msra.mxu2 %v222_v11  ;;  %v200_v36 = vld [vmem:[%s1153_s4 + $0xc8] sm:$0xff]  ;;  %v193_v37 = vld [vmem:[%s1153_s4 + $0x90] sm:$0xff]  ;;  %v179_v38 = vld [vmem:[%s1153_s4 + $0x20] sm:$0xff]  ;;  %v1247_v10 = vshrl.u32 %v389_v7, 7 }
  0x1d   : > { %856 = vmatpush.msra.mxu3 %v212_v12  ;;  %343 = vmatpush.msra.mxu1 %v221_v13  ;;  %v184_v39 = vld [vmem:[%s1153_s4 + $0x48] sm:$0xff]  ;;  %v202_v40 = vld [vmem:[%s1153_s4 + $0xd8] sm:$0xff]  ;;  %v195_v41 = vld [vmem:[%s1153_s4 + $0xa0] sm:$0xff] }
  0x1e   : > { %277 = vmatpush.msra.mxu0 %v212_v12  ;;  %872 = vmatpush.msra.mxu2 %v221_v13  ;;  %v181_v42 = vld [vmem:[%s1153_s4 + $0x30] sm:$0xff]  ;;  %v186_v43 = vld [vmem:[%s1153_s4 + $0x58] sm:$0xff]  ;;  %v183_v45 = vld [vmem:[%s1153_s4 + $0x40] sm:$0xff]  ;;  %v403_v13 = vadd.s32 104, %v1247_v10 }
  0x1f   : > { %857 = vmatpush.msra.mxu3 %v211_v14  ;;  %344 = vmatpush.msra.mxu1 %v220_v15  ;;  %v197_v44 = vld [vmem:[%s1153_s4 + $0xb0] sm:$0xff]  ;;  %v188_v46 = vld [vmem:[%s1153_s4 + $0x68] sm:$0xff]  ;;  %v199_v47 = vld [vmem:[%s1153_s4 + $0xc0] sm:$0xff] }
  0x20   : > { %278 = vmatpush.msra.mxu0 %v211_v14  ;;  %873 = vmatpush.msra.mxu2 %v220_v15  ;;  %v185_v48 = vld [vmem:[%s1153_s4 + $0x50] sm:$0xff]  ;;  %v190_v49 = vld [vmem:[%s1153_s4 + $0x78] sm:$0xff]  ;;  %v187_v51 = vld [vmem:[%s1153_s4 + $0x60] sm:$0xff]  ;;  %v1253_v14 = vstv %s173_s30  ;;  %v402_v15 = vadd.s32 96, %v1247_v10 }
  0x21   : > { %858 = vmatpush.msra.mxu3 %v210_v16  ;;  %345 = vmatpush.msra.mxu1 %v219_v17  ;;  %v201_v50 = vld [vmem:[%s1153_s4 + $0xd0] sm:$0xff]  ;;  %v192_v52 = vld [vmem:[%s1153_s4 + $0x88] sm:$0xff]  ;;  %s795_s4 = sshll.u32 %s148_s3, 4 }
  0x22   : > { %799 = vmatmul.msk.f32.vlgmr.msra.gmra.mxu1 %vm228_vm0, %v176_v18  ;;  %279 = vmatpush.msra.mxu0 %v210_v16  ;;  %v418_v16 = vadd.s32 %v1253_v14, %v403_v13  ;;  %s1314_s5 = scalar_lea.vmem [#allocation2], %s795_s4  }
  0x23   : > { %859 = vmatpush.msra.mxu3 %v209_v19  ;;  %874 = vmatpush.msra.mxu2 %v219_v17  ;;  %v401_v17 = vadd.s32 88, %v1247_v10 }
  0x24   : > { %280 = vmatpush.msra.mxu0 %v209_v19  ;;  %808 = vmatmul.msk.f32.vlgmr.msra.gmra.mxu2 %vm228_vm0, %v194_v20  ;;  %v417_v20 = vadd.s32 %v1253_v14, %v402_v15  ;;  %vm432_vm1 = vcmp.lt.s32.totalorder %v418_v16, 115 }
  0x25   : > { %860 = vmatpush.msra.mxu3 %v208_v21 }
  0x26   : > { %281 = vmatpush.msra.mxu0 %v208_v21  ;;  %v400_v21 = vadd.s32 80, %v1247_v10  ;;  %vm431_vm2 = vcmp.lt.s32.totalorder %v417_v20, 115 }
  0x27   : > { %861 = vmatpush.msra.mxu3 %v207_v22 }
  0x28   : > { %282 = vmatpush.msra.mxu0 %v207_v22 }
  0x29   : > { %862 = vmatpush.msra.mxu3 %v206_v23 }
  0x2a   : > { %800 = vmatmul.msk.f32.gmra.mxu1 %vm228_vm0, %v178_v24  ;;  %283 = vmatpush.msra.mxu0 %v206_v23  ;;  %v416_v23 = vadd.s32 %v1253_v14, %v401_v17  ;;  %v399_v24 = vadd.s32 72, %v1247_v10 }
  0x2b   : > { %863 = vmatpush.msra.mxu3 %v205_v25 }
  0x2c   : > { %284 = vmatpush.msra.mxu0 %v205_v25  ;;  %809 = vmatmul.msk.f32.gmra.mxu2 %vm228_vm0, %v196_v26  ;;  %vm430_vm3 = vcmp.lt.s32.totalorder %v416_v23, 115 }
  0x2d   : > { %864 = vmatpush.msra.mxu3 %v204_v27 }
  0x2e   : > { %285 = vmatpush.msra.mxu0 %v204_v27  ;;  %v415_v27 = vadd.s32 %v1253_v14, %v400_v21 }
  0x2f   : > { %865 = vmatpush.msra.mxu3 %v203_v28 }
  0x30   : > { %308 = vmatmul.f32.vlgmr.msra.gmra.mxu3 %v189_v29  ;;  %286 = vmatpush.msra.mxu0 %v203_v28  ;;  %v398_v28 = vadd.s32 64, %v1247_v10  ;;  %vm429_vm4 = vcmp.lt.s32.totalorder %v415_v27, 115 }
  0x31   : > { %287 = vmatmul.f32.vlgmr.msra.gmra.mxu0 %v175_v30  ;;  %v414_v30 = vadd.s32 %v1253_v14, %v399_v24 }
  0x32   : > { %801 = vmatmul.msk.f32.gmra.mxu1 %vm228_vm0, %v180_v31  ;;  %v397_v31 = vadd.s32 56, %v1247_v10 }
  0x33   : > { %vm428_vm5 = vcmp.lt.s32.totalorder %v414_v30, 115 }
  0x34   : > { %810 = vmatmul.msk.f32.gmra.mxu2 %vm228_vm0, %v198_v32 }
  0x38   : > { %311 = vmatmul.f32.gmra.mxu3 %v191_v33  ;;  %v413_v33 = vadd.s32 %v1253_v14, %v398_v28 }
  0x39   : > { %290 = vmatmul.f32.gmra.mxu0 %v177_v34  ;;  %v396_v34 = vadd.s32 48, %v1247_v10 }
  0x3a   : > { %802 = vmatmul.msk.f32.gmra.mxu1 %vm228_vm0, %v182_v35  ;;  %vm427_vm6 = vcmp.lt.s32.totalorder %v413_v33, 115 }
  0x3c   : > { %811 = vmatmul.msk.f32.gmra.mxu2 %vm228_vm0, %v200_v36 }
  0x40   : > { %314 = vmatmul.f32.gmra.mxu3 %v193_v37  ;;  %v412_v37 = vadd.s32 %v1253_v14, %v397_v31 }
  0x41   : > { %293 = vmatmul.f32.gmra.mxu0 %v179_v38  ;;  %v395_v38 = vadd.s32 40, %v1247_v10 }
  0x42   : > { %803 = vmatmul.msk.f32.gmra.mxu1 %vm228_vm0, %v184_v39  ;;  %vm426_vm7 = vcmp.lt.s32.totalorder %v412_v37, 115 }
  0x44   : > { %812 = vmatmul.msk.f32.gmra.mxu2 %vm228_vm0, %v202_v40  ;;  %v411_v40 = vadd.s32 %v1253_v14, %v396_v34 }
  0x46   : > { %vm425_vm8 = vcmp.lt.s32.totalorder %v411_v40, 115 }
  0x48   : > { %317 = vmatmul.f32.gmra.mxu3 %v195_v41  ;;  %v394_v41 = vadd.s32 32, %v1247_v10 }
  0x49   : > { %296 = vmatmul.f32.gmra.mxu0 %v181_v42 }
  0x4a   : > { %804 = vmatmul.msk.f32.gmra.mxu1 %vm228_vm0, %v186_v43 }
  0x50   : > { %320 = vmatmul.f32.gmra.mxu3 %v197_v44  ;;  %v410_v44 = vadd.s32 %v1253_v14, %v395_v38 }
  0x51   : > { %299 = vmatmul.f32.gmra.mxu0 %v183_v45  ;;  %v393_v45 = vadd.s32 24, %v1247_v10 }
  0x52   : > { %805 = vmatmul.msk.f32.gmra.mxu1 %vm228_vm0, %v188_v46  ;;  %vm424_vm9 = vcmp.lt.s32.totalorder %v410_v44, 115 }
  0x58   : > { %323 = vmatmul.f32.gmra.mxu3 %v199_v47  ;;  %v481_v47 = vadd.s32 1, %v1247_v10 }
  0x59   : > { %302 = vmatmul.f32.gmra.mxu0 %v185_v48  ;;  %v409_v48 = vadd.s32 %v1253_v14, %v394_v41 }
  0x5a   : > { %806 = vmatmul.msk.f32.gmra.mxu1 %vm228_vm0, %v190_v49  ;;  %v392_v49 = vadd.s32 16, %v1247_v10 }
  0x5b   : > { %vm423_vm10 = vcmp.lt.s32.totalorder %v409_v48, 115 }
  0x60   : > { %326 = vmatmul.f32.gmra.mxu3 %v201_v50 }
  0x61   : > { %305 = vmatmul.f32.gmra.mxu0 %v187_v51  ;;  %v408_v51 = vadd.s32 %v1253_v14, %v393_v45 }
  0x62   : > { %807 = vmatmul.msk.f32.gmra.mxu1 %vm228_vm0, %v192_v52  ;;  %v391_v52 = vadd.s32 8, %v1247_v10 }
  0x63   : > { %vm422_vm11 = vcmp.lt.s32.totalorder %v408_v51, 115 }
  0x9f   : > { %v1224_v53 = vpop.f32.mrf.mxu1 }
  0xa7   : > { %v1226_v54 = vpop.f32.mrf.mxu1  ;;  %v374_v58 = vpop.f32.mrf.mxu2 }
  0xae   : > { %v1230_v56 = vpop.f32.mrf.mxu0 }
  0xaf   : > { %v1228_v55 = vpop.f32.mrf.mxu1  ;;  %v377_v62 = vpop.f32.mrf.mxu2 }
  0xb3   : > { %v1232_v57 = vpop.f32.mrf.mxu3 }
  0xb6   : > { %v1236_v61 = vpop.f32.mrf.mxu0 }
  0xb7   : > { %v1234_v59 = vpop.f32.mrf.mxu1  ;;  %v380_v4 = vpop.f32.mrf.mxu2 }
  0xbb   : > { %v312_v60 = vpop.f32.mrf.mxu3 }
  0xbe   : > { %v1240_v1 = vpop.f32.mrf.mxu0 }
  0xbf   : > { %v1238_v63 = vpop.f32.mrf.mxu1  ;;  %v383_v9 = vpop.f32.mrf.mxu2 }
  0xc3   : > { %v315_v0 = vpop.f32.mrf.mxu3 }
  0xc4   : > { %v375_v39 = vadd.f32 %v374_v58, %v315_v0  ;;  %v407_v0 = vadd.s32 %v1253_v14, %v392_v49 }
  0xc6   : > { %v1244_v5 = vpop.f32.mrf.mxu0  ;;  %vm421_vm14 = vcmp.lt.s32.totalorder %v407_v0, 115 }
  0xc7   : > { %v1242_v3 = vpop.f32.mrf.mxu1  ;;  %v386_v19 = vpop.f32.mrf.mxu2 }
  0xcb   : > { %v318_v2 = vpop.f32.mrf.mxu3 }
  0xcc   : > { %v378_v35 = vadd.f32 %v377_v62, %v318_v2  ;;  %v483_v62 = vmul.u32 7, %v481_v47 }
  0xce   : > { %v1250_v11 = vpop.f32.mrf.mxu0 }
  0xcf   : > { %v365_v8 = vpop.f32.mrf.mxu1  ;;  %v360_v2 = vadd.f32 %v1238_v63, %v1250_v11  ;;  %v405_v63 = vadd.s32 %v1253_v14, %v1247_v10 }
  0xd3   : > { %v321_v6 = vpop.f32.mrf.mxu3 }
  0xd4   : > { %v381_v32 = vadd.f32 %v380_v4, %v321_v6  ;;  %v406_v4 = vadd.s32 %v1253_v14, %v391_v52  ;;  %v357_v6 = vadd.f32 %v1234_v59, %v1244_v5  ;;  %v351_v59 = vadd.f32 %v1226_v54, %v1236_v61 }
  0xd5   : > { %v478_v5 = vmul.u32 7, %v391_v52  ;;  %v521_v54 = vstv %s798_s24 }
  0xd6   : > { %v303_v26 = vpop.f32.mrf.mxu0  ;;  %vm420_vm15 = vcmp.lt.s32.totalorder %v406_v4, 115  ;;  %v522_v61 = vadd.s32 %v521_v54, %v1247_v10  ;;  %v523_v15 = vadd.s32 %v521_v54, %v391_v52 }
  0xd7   : > { %v368_v18 = vpop.f32.mrf.mxu1  ;;  %v363_v58 = vadd.f32 %v1242_v3, %v303_v26 }
  0xd8   : > { %v369_v46 = vadd.f32 %v368_v18, %v1232_v57  ;;  %v476_v57 = vand.u32 127, %v389_v7  ;;  %v524_v14 = vmul.u32 7, %v522_v61 }
  0xda   : > { %vm1293_vm13 = vcmp.lt.s32.totalorder %v476_v57, %v483_v62  ;;  %v526_v16 = vsub.s32 115, %v524_v14 }
  0xdb   : > { %v324_v12 = vpop.f32.mrf.mxu3 }
  0xdc   : > { %v384_v29 = vadd.f32 %v383_v9, %v324_v12  ;;  %v354_v9 = vadd.f32 %v1228_v55, %v1240_v1  ;;  %v348_v12 = vadd.f32 %v1224_v53, %v1230_v56  ;;  %v1056_v55 = vmov 0.0  }
  0xdd   : > { %v525_v53 = vmul.u32 7, %v523_v15 }
  0xde   : > { %v306_v43 = vpop.f32.mrf.mxu0 }
  0xdf   : > { %v371_v36 = vpop.f32.mrf.mxu1  ;;  %v366_v50 = vadd.f32 %v365_v8, %v306_v43  ;;  %v482_v8 = vadd.s32 1, %v391_v52  ;;  %v527_v17 = vsub.s32 115, %v525_v53 }
  0xe0   : > { %v372_v42 = vadd.f32 %v371_v36, %v312_v60  ;;  %v477_v60 = vmul.u32 7, %v1247_v10 }
  0xe1   : > { %v484_v11 = vmul.u32 7, %v482_v8 }
  0xe2   : > { %vm1289_vm12 = vcmp.ge.s32.totalorder %v476_v57, %v477_v60 }
  0xe3   : > { %v327_v22 = vpop.f32.mrf.mxu3  ;;  %vm487_vm0 = vmand %vm1289_vm12, %vm1293_vm13 }
  0xe4   : > { %v387_v25 = vadd.f32 %v386_v19, %v327_v22  ;;  %v489_v1 = vsel %vm487_vm0, 1.0, %v1056_v55  ;;  %vm568_vm0 = vcmask 23552  }
  0xe6   : > { %813 = vmatpush.msk.msrb.mxu2 %vm432_vm1, %v387_v25  ;;  %vm419_vm1 = vcmp.lt.s32.totalorder %v405_v63, 115 }
  0xe8   : > { %814 = vmatpush.msk.msrb.mxu2 %vm431_vm2, %v384_v29  ;;  %vm491_vm2 = vcmask 916480  }
  0xea   : > { %815 = vmatpush.msk.msrb.mxu2 %vm430_vm3, %v381_v32  ;;  %vm480_vm3 = vcmp.ge.s32.totalorder %v476_v57, %v478_v5 }
  0xec   : > { %816 = vmatpush.msk.msrb.mxu2 %vm429_vm4, %v378_v35  ;;  %vm486_vm4 = vcmp.lt.s32.totalorder %v476_v57, %v484_v11 }
  0xee   : > { %817 = vmatpush.msk.msrb.mxu2 %vm428_vm5, %v375_v39  ;;  %vm488_vm5 = vmand %vm480_vm3, %vm486_vm4 }
  0xef   : > { %v490_v13 = vsel %vm488_vm5, 1.0, %v1056_v55 }
  0xf0   : > { %818 = vmatpush.msk.msrb.mxu2 %vm427_vm6, %v372_v42  ;;  %vm528_vm6 = vcmp.gt.s32.totalorder %v526_v16, 1 }
  0xf1   : > { %v529_v56 = vsel %vm528_vm6, %v526_v16, 1 }
  0xf2   : > { %819 = vmatpush.msk.msrb.mxu2 %vm426_vm7, %v369_v46  ;;  %vm532_vm7 = vcmp.lt.s32.totalorder %v529_v56, 7 }
  0xf3   : > { %v533_v18 = vsel %vm532_vm7, %v529_v56, 7 }
  0xf4   : > { %820 = vmatpush.msk.msrb.mxu2 %vm425_vm8, %v366_v50  ;;  %vm530_vm8 = vcmp.gt.s32.totalorder %v527_v17, 1  ;;  %v536_v20 = vcvt.s32.f32 %v533_v18 }
  0xf5   : > { %v531_v19 = vsel %vm530_vm8, %v527_v17, 1 }
  0xf6   : > { %821 = vmatpush.msk.msrb.mxu2 %vm424_vm9, %v363_v58  ;;  %vm534_vm9 = vcmp.lt.s32.totalorder %v531_v19, 7  ;;  %964 = vrcp.f32 %v536_v20  ;;  %v549_v28 = vand.u32 2147483648, %v536_v20  ;;  %v547_v30 = vand.u32 2147483647, %v536_v20 }
  0xf7   : > { %v535_v21 = vsel %vm534_vm9, %v531_v19, 7 }
  0xf8   : > { %822 = vmatpush.msk.msrb.mxu2 %vm423_vm10, %v360_v2  ;;  %v537_v22 = vcvt.s32.f32 %v535_v21  ;;  %vm543_vm10 = vweird.f32 %v536_v20  ;;  %v550_v32 = vor.u32 1.1754944e-38, %v549_v28  ;;  %vm548_vm13 = vcmp.eq.f32.partialorder %v547_v30, 8.507059e+37 }
  0xfa   : > { %823 = vmatpush.msk.msrb.mxu2 %vm422_vm11, %v357_v6  ;;  %966 = vrcp.f32 %v537_v22  ;;  %v564_v36 = vand.u32 2147483648, %v537_v22  ;;  %v562_v38 = vand.u32 2147483647, %v537_v22 }
  0xfc   : > { %824 = vmatpush.msk.msrb.mxu2 %vm421_vm14, %v354_v9  ;;  %v965_v23 = vpop.eup %964  ;;  %vm558_vm14 = vweird.f32 %v537_v22  ;;  %v565_v41 = vor.u32 1.1754944e-38, %v564_v36 }
  0xfd   : > { %v539_v10 = vmul.f32 %v965_v23, %v536_v20  ;;  %vm544_vm11 = vweird.f32 %v965_v23 }
  0xfe   : > { %825 = vmatpush.msk.msrb.mxu2 %vm420_vm15, %v351_v59  ;;  %vm545_vm12 = vmor %vm543_vm10, %vm544_vm11 }
  0xff   : > { %v540_v24 = vsub.f32 1.0, %v539_v10 }
 0x100   : > { %826 = vmatpush.msk.msrb.mxu2 %vm419_vm1, %v348_v12  ;;  %v967_v25 = vpop.eup %966 }
 0x101   : > { %827 = vmatmul.msk.f32.vlgmr.msrb.gmra.mxu2 %vm491_vm2, %v489_v1  ;;  %v541_v26 = vmul.f32 %v965_v23, %v540_v24  ;;  %v554_v27 = vmul.f32 %v967_v25, %v537_v22  ;;  %vm559_vm15 = vweird.f32 %v967_v25 }
 0x102   : > { %vm560_vm1 = vmor %vm558_vm14, %vm559_vm15 }
 0x103   : > { %v542_v29 = vadd.f32 %v965_v23, %v541_v26  ;;  %v555_v31 = vsub.f32 1.0, %v554_v27 }
 0x105   : > { %v546_v33 = vsel %vm545_vm12, %v965_v23, %v542_v29  ;;  %v556_v34 = vmul.f32 %v967_v25, %v555_v31 }
 0x106   : > { %v551_v35 = vsel %vm548_vm13, %v550_v32, %v546_v33 }
 0x107   : > { %v557_v37 = vadd.f32 %v967_v25, %v556_v34 }
 0x109   : > { %828 = vmatmul.msk.f32.gmra.mxu2 %vm491_vm2, %v490_v13  ;;  %v561_v42 = vsel %vm560_vm1, %v967_v25, %v557_v37  ;;  %vm563_vm2 = vcmp.eq.f32.partialorder %v562_v38, 8.507059e+37 }
 0x10a   : > { %v566_v43 = vsel %vm563_vm2, %v565_v41, %v561_v42 }
 0x184   : > { %v515_v39 = vpop.f32.mrf.mxu2 }
 0x185   : > { %v552_v40 = vmul.f32 %v551_v35, %v515_v39 }
 0x187   : > { %569 = vst.msk [vmem:[%s1314_s5] sm:$0xff] %vm568_vm0, %v552_v40 }
 0x18b   : > { %577 = sbr.rel (!%p1097_p4) target bundleno = 439 (0x1b7), region = 32 }
 0x18c   : > { %v518_v44 = vpop.f32.mrf.mxu2 }
 0x18d   : > { %v567_v45 = vmul.f32 %v566_v43, %v518_v44 }
 0x18f   : > { %570 = vst.msk [vmem:[%s1314_s5 + $0x8] sm:$0xff] %vm568_vm0, %v567_v45 }
 0x190   : > { %s1374_s11 = smov (!%p580_p8, %s579_s11), 2 }
 0x191   : > { %s831_s14 = sshll.u32 %s1374_s11, 3 }
 0x192   : > { %p834_p9 = scmp.eq.s32.totalorder %s831_s14, 0 }
 0x193   : > { %s1332_s17 = sshrl.u32 (!%p834_p9), %s1374_s11, 1 }
 0x194   : > { %588 = sbr.rel (%p834_p9) target bundleno = 439 (0x1b7), region = 36  ;;  %p835_p10 = scmp.le.s32.totalorder (!%p834_p9), %s1332_s17, 0 }
 0x199   : > { %747 = sbr.rel (%p835_p10) target bundleno = 422 (0x1a6), region = 112  ;;  %s1024_s12 = smov (!%p835_p10), %s1326_s8  }
 0x19a   : > { %s1028_s15 = smov (!%p835_p10), %s1314_s5   ;;  %s1032_s18 = smov (!%p835_p10), 0  }
 0x19b   : > { %s1036_s19 = smov (!%p835_p10), 0  }
 0x19e LB: >> { %v653_v46 = vld [vmem:[%s1030_s15] sm:$0xff]  ;;  %v655_v47 = vld [vmem:[%s1030_s15 + $0x8] sm:$0xff]  ;;  %s657_s20 = sadd.s32 1, %s1034_s18  ;;  %s647_s19 = sadd.s32 1, %s1038_s19   ;;  %s1038_s19 = sphi %s1036_s19, %s647_s19   ;;  %s1034_s18 = sphi %s1032_s18, %s1033_s18   ;;  %s1030_s15 = sphi %s1028_s15, %s662_s15   ;;  %s1026_s12 = sphi %s1024_s12, %s663_s12  }
 0x19f   : >> { %654 = vst [vmem:[%s1026_s12] sm:$0xff] %v653_v46  ;;  %p658_p11 = scmp.ge.s32.totalorder %s657_s20, %s1332_s17  ;;  %p646_p12 = scmp.ge.s32.totalorder %s647_s19, %s1332_s17 }
 0x1a0   : >> { %656 = vst [vmem:[%s1026_s12 + $0x8] sm:$0xff] %v655_v47 }
 0x1a1   : >> { %s1376_s20 = smov (%p658_p11, %s657_s20), 0  ;;  %649 = sbr.rel (!%p646_p12) target bundleno = 414 (0x19e), region = 118 }
 0x1a2   : >> { %s836_s21 = sshll.u32 %s1376_s20, 4  ;;  %s1033_s18 = smov %s1376_s20  }
 0x1a3   : >> { %s662_s15 = scalar_lea.vmem %s1314_s5, %s836_s21 [#allocation2]   ;;  %s663_s12 = scalar_lea.vmem %s1326_s8, %s836_s21  }
 0x1a6 PF: > { %s1342_s22 = sand.u32 1, %s1374_s11   ;;  %s848_s23 = sshll.u32 %s1332_s17, 4 }
 0x1a7   : > { %s668_s25 = scalar_lea.vmem %s1314_s5, %s848_s23 [#allocation2]   ;;  %s670_s26 = scalar_lea.vmem %s1326_s8, %s848_s23  }
 0x1a8   : > { %p841_p13 = scmp.le.s32.totalorder %s1342_s22, 0 }
 0x1a9   : > { %s1040_s27 = smov (!%p841_p13), %s670_s26   ;;  %s1044_s28 = smov (!%p841_p13), %s668_s25  }
 0x1aa   : > { %761 = sbr.rel (%p841_p13) target bundleno = 439 (0x1b7), region = 123  ;;  %s1048_s29 = smov (!%p841_p13), 0  }
 0x1ab   : > { %s1052_s30 = smov (!%p841_p13), 0  }
 0x1af LB: >> { %v680_v48 = vld [vmem:[%s1046_s28] sm:$0xff]  ;;  %s682_s24 = sadd.s32 1, %s1050_s29  ;;  %s674_s30 = sadd.s32 1, %s1054_s30   ;;  %s1054_s30 = sphi %s1052_s30, %s674_s30   ;;  %s1050_s29 = sphi %s1048_s29, %s1049_s29   ;;  %s1046_s28 = sphi %s1044_s28, %s687_s28   ;;  %s1042_s27 = sphi %s1040_s27, %s688_s27  }
 0x1b0   : >> { %681 = vst [vmem:[%s1042_s27] sm:$0xff] %v680_v48  ;;  %p683_p0 = scmp.ge.s32.totalorder %s682_s24, %s1342_s22  ;;  %p673_p1 = scmp.ge.s32.totalorder %s674_s30, %s1342_s22 }
 0x1b2   : >> { %s1378_s24 = smov (%p683_p0, %s682_s24), 0  ;;  %676 = sbr.rel (!%p673_p1) target bundleno = 431 (0x1af), region = 129 }
 0x1b3   : >> { %s842_s3 = sshll.u32 %s1378_s24, 3  ;;  %s1049_s29 = smov %s1378_s24  }
 0x1b4   : >> { %s687_s28 = scalar_lea.vmem %s668_s25, %s842_s3 [#allocation2]   ;;  %s688_s27 = scalar_lea.vmem %s670_s26, %s842_s3  }
 0x1b7 PF: > { %p9_p2 = scmp.ge.s32.totalorder %s1087_s13, 4   ;;  %s1368_s9 = smov %s1018_s10 }
 0x1b8   : > { %s1369_s10 = smov %s1095_s16  ;;  %s1370_s11 = smov %s1087_s13 }
 0x1b9   :  { %11 = sbr.rel (!%p9_p2) target bundleno = 2 (0x2), region = 140 }

</bundles_post_ra>
